<compile_context>
chip_gen: v7x
topology: tpu7x:2x2x1
jax: 0.10.0
libtpu: 0.0.40
codegen_flags: <defaults>
</compile_context>

<pallas_src>
import numpy as np
import jax
import jax.numpy as jnp
from jax.experimental import pallas as pl
from jax.experimental.pallas import tpu as pltpu

NC = 256            # MLP hidden / output channels (PyTorch default nc=256)
INIT_GAIN = 0.02    # init.normal_(w, 0.0, init_gain)
MAX_TILE_N = 256    # rows (sampled patches) per grid step (use 128 on v5e)
SUBLANE = 16        # bf16-safe sublane alignment for row tiles


def _round_up(x, m):
    return (x + m - 1) // m * m


def _choose_tile_n(n, max_tile=MAX_TILE_N, sublane=SUBLANE):
    """Pick the row-tile size: sublane aligned, capped at max_tile, and (when n
    allows it) at least two grid steps so v7x's two TensorCores both get work."""
    max_tile = max(sublane, max_tile // sublane * sublane)
    n_al = _round_up(max(n, sublane), sublane)
    if n_al >= 2 * sublane:
        tile = min(max_tile, _round_up((n_al + 1) // 2, sublane))
    else:
        tile = n_al
    return tile


# ---------------- Pallas kernels ----------------

def _mlp_l2norm_kernel(x_ref, w1_ref, b1_ref, w2_ref, b2_ref, o_ref):
    # (tile_n, c_pad) @ (c_pad, NC) on the MXU, f32 accumulation.
    h = jnp.dot(x_ref[...], w1_ref[...], preferred_element_type=jnp.float32)
    h = jnp.maximum(h + b1_ref[...], 0.0)                       # bias + ReLU in f32
    y = jnp.dot(h.astype(w2_ref.dtype), w2_ref[...],
                preferred_element_type=jnp.float32) + b2_ref[...]
    # Normalize(power=2): y / (||y||_2 + 1e-7); divide -> EUP reciprocal.
    norm = jnp.sqrt(jnp.sum(y * y, axis=-1, keepdims=True))
    o_ref[...] = (y * pl.reciprocal(norm + 1e-7, approx=True)).astype(o_ref.dtype)


def _l2norm_kernel(x_ref, o_ref):
    x = x_ref[...].astype(jnp.float32)
    # Zero pad-channels contribute nothing to the norm, so this is exact.
    norm = jnp.sqrt(jnp.sum(x * x, axis=-1, keepdims=True))
    o_ref[...] = (x * pl.reciprocal(norm + 1e-7, approx=True)).astype(o_ref.dtype)


# ---------------- pallas_call wrappers ----------------

def mlp_l2norm(x_pad, w1p, b1, w2, b2, *, tile_n, out_dtype):
    """x_pad: (n_pad, c_pad) sampled-patch rows (compute dtype, channel zero-padded).
    w1p: (c_pad, NC) with zero rows for pad channels; w2: (NC, NC); biases (1, NC) f32."""
    n_pad, c_pad = x_pad.shape
    nc = w1p.shape[1]
    return pl.pallas_call(
        _mlp_l2norm_kernel,
        out_shape=jax.ShapeDtypeStruct((n_pad, nc), out_dtype),
        grid=(n_pad // tile_n,),
        in_specs=[
            pl.BlockSpec((tile_n, c_pad), lambda i: (i, 0)),   # row tile (pipelined)
            pl.BlockSpec((c_pad, nc), lambda i: (0, 0)),        # w1 (resident)
            pl.BlockSpec((1, nc), lambda i: (0, 0)),            # b1 (resident)
            pl.BlockSpec((nc, nc), lambda i: (0, 0)),            # w2 (resident)
            pl.BlockSpec((1, nc), lambda i: (0, 0)),             # b2 (resident)
        ],
        out_specs=pl.BlockSpec((tile_n, nc), lambda i: (i, 0)),
        compiler_params=pltpu.CompilerParams(
            dimension_semantics=("parallel",),
            vmem_limit_bytes=32 * 1024 * 1024),
    )(x_pad, w1p, b1, w2, b2)


def l2norm(x_pad, *, tile_n, out_dtype):
    n_pad, c_pad = x_pad.shape
    return pl.pallas_call(
        _l2norm_kernel,
        out_shape=jax.ShapeDtypeStruct((n_pad, c_pad), out_dtype),
        grid=(n_pad // tile_n,),
        in_specs=[pl.BlockSpec((tile_n, c_pad), lambda i: (i, 0))],
        out_specs=pl.BlockSpec((tile_n, c_pad), lambda i: (i, 0)),
        compiler_params=pltpu.CompilerParams(
            dimension_semantics=("parallel",),
            vmem_limit_bytes=32 * 1024 * 1024),
    )(x_pad)


# ---------------- module-level glue ----------------

def create_mlp_params(feats, key):
    """Equivalent of PatchSampleF.create_mlp + init_net('normal', 0.02).
    Linear weights ~ N(0, init_gain), biases = 0, stored as (in, out)."""
    params = []
    for mlp_id, feat in enumerate(feats):
        input_nc = feat.shape[1]                      # NCHW -> channels
        k1, k2 = jax.random.split(jax.random.fold_in(key, mlp_id))
        w1 = INIT_GAIN * jax.random.normal(k1, (input_nc, NC), jnp.float32)
        b1 = jnp.zeros((1, NC), jnp.float32)
        w2 = INIT_GAIN * jax.random.normal(k2, (NC, NC), jnp.float32)
        b2 = jnp.zeros((1, NC), jnp.float32)
        params.append((w1, b1, w2, b2))
    return params


def patch_sample_f(feats, mlp_params=None, num_patches=64, patch_ids=None,
                   use_mlp=True, key=None, max_tile_n=MAX_TILE_N,
                   compute_dtype=jnp.bfloat16):
    """Forward pass of PatchSampleF. `feats` is a list of NCHW arrays."""
    return_ids, return_feats = [], []
    for feat_id, feat in enumerate(feats):
        B, C, H, W = feat.shape
        HW = H * W
        feat_reshape = jnp.transpose(feat, (0, 2, 3, 1)).reshape(B, HW, C)

        if num_patches > 0:
            if patch_ids is not None:
                patch_id = jnp.asarray(patch_ids[feat_id], jnp.int32)
            else:
                k = jax.random.fold_in(key, feat_id)
                patch_id = jax.random.permutation(k, HW)[
                    : int(min(num_patches, HW))].astype(jnp.int32)
            # Gather only the sampled rows in XLA; same flatten(0,1) row order
            # as PyTorch: (b0,p0..pk),(b1,p0..pk),...
            x_sample = jnp.take(feat_reshape, patch_id, axis=1).reshape(-1, C)
        else:
            # TODO(synk): num_patches==0 path (full map, norm over dim 1 of the
            # (B,HW,C) tensor, reshape back to NCHW) is not implemented.
            raise NotImplementedError("num_patches == 0 path not implemented")

        n = x_sample.shape[0]
        tile_n = _choose_tile_n(n, max_tile_n)
        n_pad = _round_up(n, tile_n)
        c_pad = _round_up(C, 128)
        # Pad only the small sampled set (zero rows/channels are inert and sliced off).
        x_pad = jnp.pad(x_sample, ((0, n_pad - n), (0, c_pad - C)))

        if use_mlp:
            w1, b1, w2, b2 = mlp_params[feat_id]
            w1p = jnp.pad(w1, ((0, c_pad - C), (0, 0))).astype(compute_dtype)
            out = mlp_l2norm(x_pad.astype(compute_dtype), w1p,
                             b1.astype(jnp.float32),
                             w2.astype(compute_dtype),
                             b2.astype(jnp.float32),
                             tile_n=tile_n, out_dtype=feat.dtype)
            x_out = out[:n]                               # (N, NC)
        else:
            out = l2norm(x_pad, tile_n=tile_n, out_dtype=feat.dtype)
            x_out = out[:n, :C]                           # (N, C)

        return_ids.append(patch_id)
        return_feats.append(x_out)
    return return_feats, return_ids


# ---------------- pure-JAX reference for verification ----------------

def _reference(feats, mlp_params, patch_ids, use_mlp):
    outs = []
    for feat_id, feat in enumerate(feats):
        B, C, H, W = feat.shape
        fr = jnp.transpose(feat, (0, 2, 3, 1)).reshape(B, H * W, C)
        x = jnp.take(fr, patch_ids[feat_id], axis=1).reshape(-1, C)
        if use_mlp:
            w1, b1, w2, b2 = mlp_params[feat_id]
            x = jnp.maximum(x @ w1 + b1, 0.0) @ w2 + b2
        norm = jnp.sqrt(jnp.sum(x * x, axis=-1, keepdims=True))
        outs.append(x / (norm + 1e-7))
    return outs


if __name__ == "__main__":
    key = jax.random.PRNGKey(0)
    k_feat0, k_feat1, k_mlp, k_perm = jax.random.split(key, 4)

    # Two feature levels (NCHW), small shapes.
    feat0 = jax.random.normal(k_feat0, (2, 4, 16, 16), jnp.float32)
    feat1 = jax.random.normal(k_feat1, (2, 8, 8, 8), jnp.float32)
    feats = [feat0, feat1]

    num_patches = 16
    # Deterministic patch ids (stand-in for torch.randperm).
    patch_ids = [
        jax.random.permutation(jax.random.fold_in(k_perm, i),
                               f.shape[2] * f.shape[3])[:num_patches].astype(jnp.int32)
        for i, f in enumerate(feats)
    ]

    mlp_params = create_mlp_params(feats, k_mlp)
    ref_feats = _reference(feats, mlp_params, patch_ids, use_mlp=True)

    # use_mlp=True, bf16 matmuls (default): loose tolerance covers bf16 rounding
    # (output is L2-normalized so absolute error stays small).
    out_feats, out_ids = patch_sample_f(
        feats, mlp_params=mlp_params, num_patches=num_patches,
        patch_ids=patch_ids, use_mlp=True, compute_dtype=jnp.bfloat16)
    out_feats = [jax.block_until_ready(o) for o in out_feats]
    for o, r in zip(out_feats, ref_feats):
        assert o.shape == r.shape, (o.shape, r.shape)
        np.testing.assert_allclose(np.asarray(o), np.asarray(r),
                                   rtol=2e-2, atol=1e-2)

    # use_mlp=True, f32 matmuls: tight tolerance (only the approx reciprocal).
    out_feats_f32, _ = patch_sample_f(
        feats, mlp_params=mlp_params, num_patches=num_patches,
        patch_ids=patch_ids, use_mlp=True, compute_dtype=jnp.float32)
    out_feats_f32 = [jax.block_until_ready(o) for o in out_feats_f32]
    for o, r in zip(out_feats_f32, ref_feats):
        assert o.shape == r.shape, (o.shape, r.shape)
        np.testing.assert_allclose(np.asarray(o), np.asarray(r),
                                   rtol=2e-3, atol=2e-3)

    # use_mlp=False path (L2 norm only, f32).
    out_feats2, _ = patch_sample_f(
        feats, num_patches=num_patches, patch_ids=patch_ids, use_mlp=False)
    out_feats2 = [jax.block_until_ready(o) for o in out_feats2]
    ref_feats2 = _reference(feats, mlp_params, patch_ids, use_mlp=False)
    for o, r in zip(out_feats2, ref_feats2):
        assert o.shape == r.shape, (o.shape, r.shape)
        np.testing.assert_allclose(np.asarray(o), np.asarray(r),
                                   rtol=2e-3, atol=2e-3)

    print("KERNEL_OK")
</pallas_src>

<mosaic_0001>
module attributes {stable_mosaic.version = 11 : i64} {
  func.func @_mlp_l2norm_kernel(%arg0: i32, %arg1: memref<16x128xbf16, #tpu.memory_space<vmem>>, %arg2: memref<128x256xbf16, #tpu.memory_space<vmem>>, %arg3: memref<1x256xf32, #tpu.memory_space<vmem>>, %arg4: memref<256x256xbf16, #tpu.memory_space<vmem>>, %arg5: memref<1x256xf32, #tpu.memory_space<vmem>>, %arg6: memref<16x256xf32, #tpu.memory_space<vmem>>) attributes {dimension_semantics = [#tpu.dimension_semantics<parallel>], iteration_bounds = array<i64: 2>, scalar_prefetch = 0 : i64, scratch_operands = 0 : i64, tpu.core_type = #tpu.core_type<tc>, window_params = [{transform_indices = @transform_0, window_bounds = array<i64: 16, 128>}, {pipeline_mode = #tpu.pipeline_mode<synchronous>, transform_indices = @transform_1, window_bounds = array<i64: 128, 256>}, {pipeline_mode = #tpu.pipeline_mode<synchronous>, transform_indices = @transform_2, window_bounds = array<i64: 1, 256>}, {pipeline_mode = #tpu.pipeline_mode<synchronous>, transform_indices = @transform_3, window_bounds = array<i64: 256, 256>}, {pipeline_mode = #tpu.pipeline_mode<synchronous>, transform_indices = @transform_4, window_bounds = array<i64: 1, 256>}, {transform_indices = @transform_5, window_bounds = array<i64: 16, 256>}]} {
    %c0 = arith.constant 0 : index
    %c0_0 = arith.constant 0 : index
    %0 = vector.load %arg1[%c0, %c0_0] : memref<16x128xbf16, #tpu.memory_space<vmem>>, vector<16x128xbf16>
    %c0_1 = arith.constant 0 : index
    %c0_2 = arith.constant 0 : index
    %1 = vector.load %arg2[%c0_1, %c0_2] : memref<128x256xbf16, #tpu.memory_space<vmem>>, vector<128x256xbf16>
    %cst = arith.constant dense<0.000000e+00> : vector<16x256xf32>
    %2 = tpu.matmul %0, %1, %cst {dimension_numbers = #tpu.dot_dimension_numbers<[1], [0], [0], [1], [0, 0, 1, 1], [], []>} : vector<16x128xbf16>, vector<128x256xbf16>, vector<16x256xf32> -> vector<16x256xf32>
    %c0_3 = arith.constant 0 : index
    %c0_4 = arith.constant 0 : index
    %3 = vector.load %arg3[%c0_3, %c0_4] : memref<1x256xf32, #tpu.memory_space<vmem>>, vector<1x256xf32>
    %4 = vector.broadcast %3 : vector<1x256xf32> to vector<16x256xf32>
    %5 = arith.addf %2, %4 : vector<16x256xf32>
    %cst_5 = arith.constant 0.000000e+00 : f32
    %6 = vector.broadcast %cst_5 : f32 to vector<16x256xf32>
    %7 = arith.maximumf %5, %6 : vector<16x256xf32>
    %8 = arith.truncf %7 : vector<16x256xf32> to vector<16x256xbf16>
    %c0_6 = arith.constant 0 : index
    %c0_7 = arith.constant 0 : index
    %9 = vector.load %arg4[%c0_6, %c0_7] : memref<256x256xbf16, #tpu.memory_space<vmem>>, vector<256x256xbf16>
    %cst_8 = arith.constant dense<0.000000e+00> : vector<16x256xf32>
    %10 = tpu.matmul %8, %9, %cst_8 {dimension_numbers = #tpu.dot_dimension_numbers<[1], [0], [0], [1], [0, 0, 1, 1], [], []>} : vector<16x256xbf16>, vector<256x256xbf16>, vector<16x256xf32> -> vector<16x256xf32>
    %c0_9 = arith.constant 0 : index
    %c0_10 = arith.constant 0 : index
    %11 = vector.load %arg5[%c0_9, %c0_10] : memref<1x256xf32, #tpu.memory_space<vmem>>, vector<1x256xf32>
    %12 = vector.broadcast %11 : vector<1x256xf32> to vector<16x256xf32>
    %13 = arith.addf %10, %12 : vector<16x256xf32>
    %14 = arith.mulf %13, %13 : vector<16x256xf32>
    %cst_11 = arith.constant dense<0.000000e+00> : vector<16xf32>
    %15 = vector.multi_reduction <add>, %14, %cst_11 [1] : vector<16x256xf32> to vector<16xf32>
    %16 = vector.shape_cast %15 : vector<16xf32> to vector<16x1xf32>
    %17 = math.sqrt %16 : vector<16x1xf32>
    %cst_12 = arith.constant 1.000000e-07 : f32
    %18 = vector.broadcast %cst_12 : f32 to vector<16x1xf32>
    %19 = arith.addf %17, %18 : vector<16x1xf32>
    %20 = tpu.reciprocal %19 {approx = true} : vector<16x1xf32> -> vector<16x1xf32>
    %21 = vector.broadcast %20 : vector<16x1xf32> to vector<16x256xf32>
    %22 = arith.mulf %13, %21 : vector<16x256xf32>
    %c0_13 = arith.constant 0 : index
    %c0_14 = arith.constant 0 : index
    %23 = vector.load %arg6[%c0_13, %c0_14] : memref<16x256xf32, #tpu.memory_space<vmem>>, vector<16x256xf32>
    tpu.vector_store %arg6[%c0_13, %c0_14], %22 {strides = array<i32>} : memref<16x256xf32, #tpu.memory_space<vmem>>, vector<16x256xf32>,
    return
  }
  func.func @transform_0(%arg0: i32) -> (i32, i32) {
    %c0_i32 = arith.constant 0 : i32
    %c0_i32_0 = arith.constant 0 : i32
    return %arg0, %c0_i32 : i32, i32
  }
  func.func @transform_1(%arg0: i32) -> (i32, i32) {
    %c0_i32 = arith.constant 0 : i32
    %c0_i32_0 = arith.constant 0 : i32
    %c0_i32_1 = arith.constant 0 : i32
    return %c0_i32, %c0_i32_0 : i32, i32
  }
  func.func @transform_2(%arg0: i32) -> (i32, i32) {
    %c0_i32 = arith.constant 0 : i32
    %c0_i32_0 = arith.constant 0 : i32
    %c0_i32_1 = arith.constant 0 : i32
    return %c0_i32, %c0_i32_0 : i32, i32
  }
  func.func @transform_3(%arg0: i32) -> (i32, i32) {
    %c0_i32 = arith.constant 0 : i32
    %c0_i32_0 = arith.constant 0 : i32
    %c0_i32_1 = arith.constant 0 : i32
    return %c0_i32, %c0_i32_0 : i32, i32
  }
  func.func @transform_4(%arg0: i32) -> (i32, i32) {
    %c0_i32 = arith.constant 0 : i32
    %c0_i32_0 = arith.constant 0 : i32
    %c0_i32_1 = arith.constant 0 : i32
    return %c0_i32, %c0_i32_0 : i32, i32
  }
  func.func @transform_5(%arg0: i32) -> (i32, i32) {
    %c0_i32 = arith.constant 0 : i32
    %c0_i32_0 = arith.constant 0 : i32
    return %arg0, %c0_i32 : i32, i32
  }
}

</mosaic_0001>

<bundles_post_ra>
// kernel: tpu_custom_call.1
= control target key start
LH: loop header
LB: loop body
LE: loop exit
PB: predicated region body
PF: predicated region fallthrough
CT: control target
= control target key end

     0   :  { %10 = vsyncpa [#allocation3], 0  ;;  %s1499_s0 = inlined_call_operand.hbm [shape: bf16[32,128], index: 0, kind: input, shape index: {}]   ;;  %s1500_s1 = inlined_call_operand.hbm [shape: bf16[128,256], index: 1, kind: input, shape index: {}]   ;;  %s1501_s2 = inlined_call_operand.vmem [shape: f32[1,256], index: 2, kind: input, shape index: {}]   ;;  %s1502_s3 = inlined_call_operand.hbm [shape: bf16[256,256], index: 3, kind: input, shape index: {}]   ;;  %s1503_s4 = inlined_call_operand.vmem [shape: f32[1,256], index: 4, kind: input, shape index: {}]   ;;  %s1504_s5 = inlined_call_operand.hbm [shape: f32[32,256], index: 5, kind: output, shape index: {}]  }
   0x1   :  { %12 = vsyncpa [#allocation3 + $0x1], 0 }
   0x2   :  { %13 = vsyncpa [#allocation6], 0 }
   0x3   :  { %14 = vsyncpa [#allocation4], 0 }
   0x4   :  { %16 = vsyncpa [#allocation4 + $0x1], 0  ;;  %s1255_s18 = smov 0   ;;  %s1257_s19 = smov 0  }
   0x5   :  { %s1259_s20 = smov 0   ;;  %s1261_s21 = smov 0  }
   0x6 LB: > { %s1276_s22 = sadd.s32 4294967295, %s1212_s21   ;;  %s830_s23 = sadd.s32 4294967294, %s1212_s21   ;;  %s1212_s21 = sphi %s1261_s21, %s1524_s21   ;;  %s1208_s20 = sphi %s1259_s20, %s1523_s20   ;;  %s1204_s19 = sphi %s1257_s19, %s1522_s19   ;;  %s1200_s18 = sphi %s1255_s18, %s1521_s18  }
   0x7   : > { %p42_p0 = scmp.ne.s32.totalorder %s1204_s19, %s1200_s18  ;;  %p1505_p1 = scmp.eq.s32.totalorder %s1276_s22, 0 }
   0x8   : > { %p156_p3 = scmp.eq.s32.totalorder %s830_s23, 1  ;;  %p831_p5 = scmp.ge.s32.totalorder %s1212_s21, 1 }
   0x9   : > { %p1285_p4 = por %p1505_p1, %p42_p0  ;;  %p163_p7 = scmp.lt.s32.totalorder %s1212_s21, 3 }
   0xa   : > { %p1290_p6 = por %p156_p3, %p42_p0  ;;  %s1214_s27 = smov [#allocation5]  }
   0xb   : > { %s1508_s24 = scalar_select %p1285_p4, 1, 0 }
   0xc   : > { %s1509_s25 = scalar_select %p1290_p6, 1, 0 }
   0xd   : > { %p1295_p8 = pnand %p831_p5, %p163_p7  ;;  %s175_s28 = sshll.u32 %s1214_s27, 4  ;;  %s1299_s28 = int_to_ptr.vmem [resolvable:$true] %s175_s28 }
   0xe   : > { %s1215_s30 = smov [#allocation7]   ;;  %s1056_s9 = scalar_lea.hbm %s1500_s1, 2048 }
   0xf   : > { %p913_p9 = pneg %p1295_p8  ;;  %s191_s6 = sshll.u32 %s1215_s30, 4  ;;  %s1310_s6 = int_to_ptr.vmem [resolvable:$true] %s191_s6 }
  0x10   : > { %p1057_p12 = scmp.ne.s32.totalorder %s1500_s1, %s1056_s9  ;;  %p1063_p5 = scmp.lt.u32.totalorder %s1056_s9, %s1500_s1 }
  0x11   : > { %p1306_p11 = pnand %p913_p9, %p1505_p1 }
  0x13   : > { %p1058_p13 = pneg %p1306_p11 }
  0x15   : > { %p1059_p0 = pnand %p1058_p13, %p1057_p12 }
  0x17   : > { %p1060_p3 = pneg %p1059_p0 }
  0x19   : > { %p1065_p7 = pnand %p1063_p5, %p1060_p3 }
  0x1b   : > { %1068 = shalt.err (!%p1065_p7)
}
  0x1c   : > { %s1069_s14 = scalar_lea.vmem %s1299_s28, 2048  ;;  %p1077_p2 = scmp.lt.s32.totalorder %s1299_s28, %s1299_s28 }
  0x1d   : > { %p1070_p9 = scmp.ne.s32.totalorder %s1299_s28, %s1069_s14  ;;  %p1078_p12 = scmp.lt.s32.totalorder %s1069_s14, %s1069_s14 }
  0x1f   : > { %p1072_p10 = pnand %p1070_p9, %p1058_p13  ;;  %p1079_p0 = por %p1078_p12, %p1077_p2 }
  0x21   : > { %p1073_p1 = pneg %p1072_p10 }
  0x23   : > { %p1080_p6 = pnand %p1079_p0, %p1073_p1 }
  0x25   : > { %1083 = shalt.err (!%p1080_p6)
}
  0x26   : > { %s1216_s15 = smov 128   ;;  %s1217_s16 = smov 8  }
  0x27   : > { %916 = dma.hbm_to_vmem [thread:$0]  (!%p1306_p11), %s1500_s1, 2048, %s1299_s28, [#allocation6], %s1216_s15, %s1216_s15, %s1217_s16  }
  0x28   : > { %s1084_s7 = scalar_lea.hbm %s1502_s3, 4096 }
  0x29   : > { %p1085_p2 = scmp.ne.s32.totalorder %s1502_s3, %s1084_s7  ;;  %p1091_p10 = scmp.lt.u32.totalorder %s1084_s7, %s1502_s3 }
  0x2b   : > { %p1087_p1 = pnand %p1085_p2, %p1058_p13 }
  0x2d   : > { %p1088_p6 = pneg %p1087_p1 }
  0x2f   : > { %p1093_p3 = pnand %p1091_p10, %p1088_p6 }
  0x31   : > { %1096 = shalt.err (!%p1093_p3)
}
  0x32   : > { %s1097_s28 = scalar_lea.vmem %s1310_s6, 4096  ;;  %p1105_p12 = scmp.lt.s32.totalorder %s1310_s6, %s1310_s6 }
  0x33   : > { %p1098_p5 = scmp.ne.s32.totalorder %s1310_s6, %s1097_s28  ;;  %p1106_p0 = scmp.lt.s32.totalorder %s1097_s28, %s1097_s28 }
  0x35   : > { %p1100_p7 = pnand %p1098_p5, %p1058_p13  ;;  %p1107_p2 = por %p1106_p0, %p1105_p12 }
  0x37   : > { %p1101_p9 = pneg %p1100_p7 }
  0x39   : > { %p1108_p1 = pnand %p1107_p2, %p1101_p9 }
  0x3b   : > { %1111 = shalt.err (!%p1108_p1)
}
  0x3c   : > { %919 = dma.hbm_to_vmem [thread:$0]  (!%p1306_p11), %s1502_s3, 4096, %s1310_s6, [#allocation6], %s1216_s15, %s1216_s15, %s1217_s16  }
  0x3d   : > { %s1365_s14 = sadd.s32 1, %s1212_s21   ;;  %s29_s29 = sadd.s32 1, %s1208_s20 }
  0x3e   : > { %s26_s17 = ssub.s32 %s1212_s21, %s1365_s14  ;;  %p36_p13 = scmp.ne.s32.totalorder %s1208_s20, %s1204_s19 }
  0x3f   : > { %p27_p6 = scmp.eq.s32.totalorder %s26_s17, 0  ;;  %p37_p10 = scmp.eq.s32.totalorder %s1212_s21, 0 }
  0x40   : > { %p1512_p3 = scmp.eq.s32.totalorder %s1276_s22, 1  ;;  %p930_p7 = scmp.lt.s32.totalorder %s1212_s21, 2 }
  0x41   : > { %s1381_s27 = scalar_select %p27_p6, %s1208_s20, %s29_s29  }
  0x42   : > { %p1375_p5 = por %p1512_p3, %p36_p13  ;;  %p38_p9 = por %p37_p10, %p36_p13 }
  0x43   : > { %s208_s30 = sand.u32 1, %s1208_s20   ;;  %s898_s6 = sshll.u32 %s1212_s21, 7 }
  0x44   : > { %s1513_s23 = scalar_select %p1375_p5, 1, 0 }
  0x45   : > { %s835_s7 = sshll.u32 %s208_s30, 3  ;;  %s1388_s8 = scalar_lea.hbm %s1499_s0, %s898_s6 }
  0x46   : > { %s212_s9 = scalar_lea.vmem [#allocation2], %s835_s7  ;;  %p1392_p11 = pnand %p930_p7, %p38_p9 }
  0x47   : > { %s219_s10 = sshll.u32 %s212_s9, 4  ;;  %s1396_s28 = scalar_lea.sflag [#allocation3], %s208_s30  ;;  %s1390_s10 = int_to_ptr.vmem [resolvable:$true] %s219_s10 }
  0x48   : > { %s1112_s12 = scalar_lea.hbm %s1388_s8, 128  ;;  %p1114_p0 = pneg %p1392_p11 }
  0x49   : > { %p1113_p12 = scmp.ne.s32.totalorder %s1388_s8, %s1112_s12  ;;  %s1117_s17 = scalar_lea.hbm %s1499_s0, 256 }
  0x4a   : > { %p1118_p13 = scmp.lt.u32.totalorder %s1388_s8, %s1499_s0  ;;  %p1119_p6 = scmp.lt.u32.totalorder %s1117_s17, %s1112_s12 }
  0x4b   : > { %p1115_p2 = pnand %p1114_p0, %p1113_p12  ;;  %p1121_p3 = scmp.lt.u32.totalorder %s1112_s12, %s1388_s8 }
  0x4c   : > { %p1120_p10 = por %p1119_p6, %p1118_p13 }
  0x4d   : > { %p1116_p1 = pneg %p1115_p2 }
  0x4e   : > { %p1122_p7 = por %p1121_p3, %p1120_p10 }
  0x50   : > { %p1123_p9 = pnand %p1122_p7, %p1116_p1 }
  0x52   : > { %1126 = shalt.err (!%p1123_p9)
}
  0x53   : > { %s1127_s30 = scalar_lea.vmem %s1390_s10, 128  ;;  %s1218_s15 = smov [#allocation2]  }
  0x54   : > { %p1128_p12 = scmp.ne.s32.totalorder %s1390_s10, %s1127_s30  ;;  %s1132_s16 = sshll.u32 %s1218_s15, 4  ;;  %s1133_s16 = int_to_ptr.vmem [resolvable:$false] %s1132_s16 }
  0x55   : > { %s1134_s9 = scalar_lea.vmem %s1133_s16, 256  ;;  %p1135_p4 = scmp.lt.s32.totalorder %s1390_s10, %s1133_s16 }
  0x56   : > { %p1130_p2 = pnand %p1128_p12, %p1114_p0  ;;  %p1136_p13 = scmp.lt.s32.totalorder %s1134_s9, %s1127_s30 }
  0x58   : > { %p1131_p5 = pneg %p1130_p2  ;;  %p1137_p6 = por %p1136_p13, %p1135_p4 }
  0x5a   : > { %p1138_p10 = pnand %p1137_p6, %p1131_p5 }
  0x5c   : > { %1141 = shalt.err (!%p1138_p10)
}
  0x5d   : > { %s1219_s12 = smov 64   ;;  %s1220_s13 = smov 4  }
  0x5e   : > { %923 = dma.hbm_to_vmem [thread:$0]  (!%p1392_p11), %s1388_s8, 128, %s1390_s10, %s1396_s28, %s1219_s12, %s1219_s12, %s1220_s13  }
  0x5f   : > { %231 = sbr.rel (%p1295_p8) target bundleno = 771 (0x303), region = 40  ;;  %s1427_s29 = sand.u32 (!%p1295_p8), 1, %s1204_s19  }
  0x60   : > { %s839_s17 = sshll.u32 (!%p1295_p8), %s1427_s29, 3  ;;  %s234_s7 = scalar_lea.sflag (!%p1295_p8), [#allocation3], %s1427_s29 }
  0x61   : > { %s1431_s6 = scalar_lea.vmem (!%p1295_p8), [#allocation2], %s839_s17  ;;  %p1515_p4 = scmp.ne.s32.totalorder (!%p1295_p8), %s1508_s24, 0 }
  0x66   : > { %1187 = dma.done.wait (%p1515_p4), %s234_s7, 128  }
  0x67   : > { %1189 = vsyncadd (%p1515_p4), %s234_s7, 4294967168  ;;  %p1516_p5 = scmp.eq.s32.totalorder %s1276_s22, 0 }
  0x69   : > { %1191 = dma.done.wait (%p1516_p5), [#allocation6], 6144   ;;  %p1517_p8 = pmov %p1516_p5 }
  0x6a   : > { %v1221_v0 = vmov 0   ;;  %v975_v1 = vld [vmem:[#allocation5 + $0x4] ss:$8 sps:$4 sm:$0xff]   ;;  %v977_v2 = vld [vmem:[#allocation5] ss:$8 sps:$4 sm:$0xff]   ;;  %v999_v28 = vld [vmem:[%s1431_s6] sm:$0xff]   ;;  %v295_v50 = vlaneseq }
  0x6b   : > { %1193 = vsyncadd (%p1517_p8), [#allocation6], 4294961152  ;;  %423 = vmatprep.mubr.bf16.mxu0 %v1221_v0  ;;  %391 = vmatprep.subr.bf16.mxu0 %v975_v1  ;;  %v978_v3 = vld [vmem:[#allocation5 + $0x14] ss:$8 sps:$4 sm:$0xff]   ;;  %v980_v4 = vld [vmem:[#allocation5 + $0x10] ss:$8 sps:$4 sm:$0xff]  }
  0x6c   : > { %392 = vmatpush1.bf16.msra.mxu0 %v977_v2  ;;  %v981_v5 = vld [vmem:[#allocation5 + $0x24] ss:$8 sps:$4 sm:$0xff]   ;;  %v983_v6 = vld [vmem:[#allocation5 + $0x20] ss:$8 sps:$4 sm:$0xff]   ;;  %v984_v7 = vld [vmem:[#allocation5 + $0x34] ss:$8 sps:$4 sm:$0xff]  }
  0x6d   : > { %393 = vmatprep.subr.bf16.mxu0 %v978_v3  ;;  %v986_v8 = vld [vmem:[#allocation5 + $0x30] ss:$8 sps:$4 sm:$0xff]   ;;  %v987_v9 = vld [vmem:[#allocation5 + $0x44] ss:$8 sps:$4 sm:$0xff]   ;;  %v1002_v11 = vld [vmem:[#allocation7] ss:$8 sps:$4 sm:$0xff]  }
  0x6e   : > { %v1000_v10 = vld [vmem:[#allocation7 + $0x4] ss:$8 sps:$4 sm:$0xff]   ;;  %v1003_v12 = vld [vmem:[#allocation7 + $0x14] ss:$8 sps:$4 sm:$0xff]   ;;  %v989_v13 = vld [vmem:[#allocation5 + $0x40] ss:$8 sps:$4 sm:$0xff]  }
  0x6f   : > { %644 = vmatprep.subr.bf16.mxu1 %v1000_v10  ;;  %v1005_v14 = vld [vmem:[#allocation7 + $0x10] ss:$8 sps:$4 sm:$0xff]   ;;  %v990_v15 = vld [vmem:[#allocation5 + $0x54] ss:$8 sps:$4 sm:$0xff]   ;;  %v1006_v16 = vld [vmem:[#allocation7 + $0x24] ss:$8 sps:$4 sm:$0xff]  }
  0x70   : > { %394 = vmatpush1.bf16.msra.mxu0 %v980_v4  ;;  %645 = vmatpush1.bf16.msra.mxu1 %v1002_v11  ;;  %v992_v17 = vld [vmem:[#allocation5 + $0x50] ss:$8 sps:$4 sm:$0xff]   ;;  %v1008_v18 = vld [vmem:[#allocation7 + $0x20] ss:$8 sps:$4 sm:$0xff]   ;;  %v993_v19 = vld [vmem:[#allocation5 + $0x64] ss:$8 sps:$4 sm:$0xff]  }
  0x71   : > { %395 = vmatprep.subr.bf16.mxu0 %v981_v5  ;;  %646 = vmatprep.subr.bf16.mxu1 %v1003_v12  ;;  %v1009_v20 = vld [vmem:[#allocation7 + $0x34] ss:$8 sps:$4 sm:$0xff]   ;;  %v995_v21 = vld [vmem:[#allocation5 + $0x60] ss:$8 sps:$4 sm:$0xff]   ;;  %v1011_v22 = vld [vmem:[#allocation7 + $0x30] ss:$8 sps:$4 sm:$0xff]  }
  0x72   : > { %v996_v23 = vld [vmem:[#allocation5 + $0x74] ss:$8 sps:$4 sm:$0xff]   ;;  %v1012_v24 = vld [vmem:[#allocation7 + $0x44] ss:$8 sps:$4 sm:$0xff]   ;;  %v998_v25 = vld [vmem:[#allocation5 + $0x70] ss:$8 sps:$4 sm:$0xff]  }
  0x73   : > { %v1014_v26 = vld [vmem:[#allocation7 + $0x40] ss:$8 sps:$4 sm:$0xff]   ;;  %v1015_v27 = vld [vmem:[#allocation7 + $0x54] ss:$8 sps:$4 sm:$0xff]   ;;  %v1017_v29 = vld [vmem:[#allocation7 + $0x50] ss:$8 sps:$4 sm:$0xff]  }
  0x74   : > { %396 = vmatpush1.bf16.msra.mxu0 %v983_v6  ;;  %647 = vmatpush1.bf16.msra.mxu1 %v1005_v14  ;;  %v1018_v30 = vld [vmem:[#allocation7 + $0x64] ss:$8 sps:$4 sm:$0xff]   ;;  %v1020_v31 = vld [vmem:[#allocation7 + $0x60] ss:$8 sps:$4 sm:$0xff]   ;;  %v1021_v32 = vld [vmem:[#allocation7 + $0x74] ss:$8 sps:$4 sm:$0xff]  }
  0x75   : > { %397 = vmatprep.subr.bf16.mxu0 %v984_v7  ;;  %648 = vmatprep.subr.bf16.mxu1 %v1006_v16  ;;  %v1023_v33 = vld [vmem:[#allocation7 + $0x70] ss:$8 sps:$4 sm:$0xff]   ;;  %v1024_v34 = vld [vmem:[#allocation7 + $0x84] ss:$8 sps:$4 sm:$0xff]   ;;  %v1026_v35 = vld [vmem:[#allocation7 + $0x80] ss:$8 sps:$4 sm:$0xff]  }
  0x76   : > { %v1027_v36 = vld [vmem:[#allocation7 + $0x94] ss:$8 sps:$4 sm:$0xff]   ;;  %v1029_v37 = vld [vmem:[#allocation7 + $0x90] ss:$8 sps:$4 sm:$0xff]   ;;  %v1030_v38 = vld [vmem:[#allocation7 + $0xa4] ss:$8 sps:$4 sm:$0xff]  }
  0x77   : > { %v1032_v39 = vld [vmem:[#allocation7 + $0xa0] ss:$8 sps:$4 sm:$0xff]   ;;  %v1033_v40 = vld [vmem:[#allocation7 + $0xb4] ss:$8 sps:$4 sm:$0xff]   ;;  %v1035_v41 = vld [vmem:[#allocation7 + $0xb0] ss:$8 sps:$4 sm:$0xff]  }
  0x78   : > { %398 = vmatpush1.bf16.msra.mxu0 %v986_v8  ;;  %649 = vmatpush1.bf16.msra.mxu1 %v1008_v18  ;;  %v1036_v42 = vld [vmem:[#allocation7 + $0xc4] ss:$8 sps:$4 sm:$0xff]   ;;  %v1038_v43 = vld [vmem:[#allocation7 + $0xc0] ss:$8 sps:$4 sm:$0xff]   ;;  %v1039_v44 = vld [vmem:[#allocation7 + $0xd4] ss:$8 sps:$4 sm:$0xff]  }
  0x79   : > { %399 = vmatprep.subr.bf16.mxu0 %v987_v9  ;;  %650 = vmatprep.subr.bf16.mxu1 %v1009_v20  ;;  %v1041_v45 = vld [vmem:[#allocation7 + $0xd0] ss:$8 sps:$4 sm:$0xff]   ;;  %v1042_v46 = vld [vmem:[#allocation7 + $0xe4] ss:$8 sps:$4 sm:$0xff]   ;;  %v1044_v47 = vld [vmem:[#allocation7 + $0xe0] ss:$8 sps:$4 sm:$0xff]  }
  0x7a   : > { %v1045_v48 = vld [vmem:[#allocation7 + $0xf4] ss:$8 sps:$4 sm:$0xff]   ;;  %v1047_v49 = vld [vmem:[#allocation7 + $0xf0] ss:$8 sps:$4 sm:$0xff]   ;;  %v296_v51 = vshrl.u32 %v295_v50, 7  ;;  %s842_s11 = sshll.u32 %s1427_s29, 5 }
  0x7b   : > { %v293_v53 = vld [vmem:[%s1501_s2] sm:$0x3]  ;;  %s900_s28 = sshll.u32 %s1276_s22, 9  ;;  %s271_s30 = scalar_lea.vmem [#allocation8], %s842_s11 }
  0x7c   : > { %400 = vmatpush1.bf16.msra.mxu0 %v989_v13  ;;  %651 = vmatpush1.bf16.msra.mxu1 %v1011_v22  ;;  %v297_v52 = vsub.s32 0, %v296_v51  ;;  %v301_v54 = vsub.s32 1, %v296_v51  ;;  %v472_v7 = vld [vmem:[%s1503_s4] sm:$0x3]  ;;  %s738_s15 = sshll.u32 %s271_s30, 4  ;;  %s1453_s12 = scalar_lea.hbm %s1504_s5, %s900_s28  ;;  %s1455_s15 = int_to_ptr.vmem [resolvable:$true] %s738_s15 }
  0x7d   : > { %401 = vmatprep.subr.bf16.mxu0 %v990_v15  ;;  %652 = vmatprep.subr.bf16.mxu1 %v1012_v24  ;;  %s724_s22 = scalar_lea.sflag [#allocation4], %s1427_s29  ;;  %s1142_s13 = scalar_lea.vmem %s1455_s15, 512 }
  0x7e   : > { %v298_v55 = vrot.slane %v293_v53, %v297_v52  ;;  %v302_v56 = vrot.slane %v293_v53, %v301_v54  ;;  %v477_v8 = vrot.slane %v472_v7, %v297_v52  ;;  %v481_v9 = vrot.slane %v472_v7, %v301_v54  ;;  %p1143_p11 = scmp.ne.s32.totalorder %s1455_s15, %s1142_s13  ;;  %p1518_p0 = scmp.ne.s32.totalorder %s1513_s23, 0 }
  0x7f   : > { %s1222_s17 = smov [#allocation8]  }
  0x80   : > { %402 = vmatpush1.bf16.msra.mxu0 %v992_v17  ;;  %653 = vmatpush1.bf16.msra.mxu1 %v1014_v26  ;;  %p1144_p1 = pnand %p1143_p11, %p1518_p0  ;;  %s1146_s7 = sshll.u32 %s1222_s17, 4  ;;  %s1147_s7 = int_to_ptr.vmem [resolvable:$false] %s1146_s7 }
  0x81   : > { %403 = vmatprep.subr.bf16.mxu0 %v993_v19  ;;  %654 = vmatprep.subr.bf16.mxu1 %v1015_v27  ;;  %s1148_s6 = scalar_lea.vmem %s1147_s7, 1024  ;;  %p1149_p7 = scmp.lt.s32.totalorder %s1455_s15, %s1147_s7 }
  0x82   : > { %p1145_p3 = pneg %p1144_p1  ;;  %p1150_p9 = scmp.lt.s32.totalorder %s1148_s6, %s1142_s13 }
  0x84   : > { %404 = vmatpush1.bf16.msra.mxu0 %v995_v21  ;;  %655 = vmatpush1.bf16.msra.mxu1 %v1017_v29  ;;  %p1151_p12 = por %p1150_p9, %p1149_p7 }
  0x85   : > { %405 = vmatprep.subr.bf16.mxu0 %v996_v23  ;;  %656 = vmatprep.subr.bf16.mxu1 %v1018_v30 }
  0x86   : > { %p1152_p2 = pnand %p1151_p12, %p1145_p3 }
  0x88   : > { %406 = vmatpush1.bf16.msra.mxu0 %v998_v25  ;;  %657 = vmatpush1.bf16.msra.mxu1 %v1020_v31 }
  0x89   : > { %658 = vmatprep.subr.bf16.mxu1 %v1021_v32 }
  0x8b   : > { %424 = vmatmul.mubr.bf16.vlgmr.msra.gmra.mrb[0].mxu0 %v999_v28 }
  0x8c   : > { %659 = vmatpush1.bf16.msra.mxu1 %v1023_v33 }
  0x8d   : > { %660 = vmatprep.subr.bf16.mxu1 %v1024_v34 }
  0x90   : > { %661 = vmatpush1.bf16.msra.mxu1 %v1026_v35 }
  0x91   : > { %662 = vmatprep.subr.bf16.mxu1 %v1027_v36 }
  0x94   : > { %663 = vmatpush1.bf16.msra.mxu1 %v1029_v37 }
  0x95   : > { %664 = vmatprep.subr.bf16.mxu1 %v1030_v38 }
  0x98   : > { %665 = vmatpush1.bf16.msra.mxu1 %v1032_v39 }
  0x99   : > { %666 = vmatprep.subr.bf16.mxu1 %v1033_v40 }
  0x9c   : > { %667 = vmatpush1.bf16.msra.mxu1 %v1035_v41 }
  0x9d   : > { %668 = vmatprep.subr.bf16.mxu1 %v1036_v42 }
  0xa0   : > { %669 = vmatpush1.bf16.msra.mxu1 %v1038_v43 }
  0xa1   : > { %670 = vmatprep.subr.bf16.mxu1 %v1039_v44 }
  0xa4   : > { %671 = vmatpush1.bf16.msra.mxu1 %v1041_v45 }
  0xa5   : > { %672 = vmatprep.subr.bf16.mxu1 %v1042_v46 }
  0xa8   : > { %673 = vmatpush1.bf16.msra.mxu1 %v1044_v47 }
  0xa9   : > { %674 = vmatprep.subr.bf16.mxu1 %v1045_v48 }
  0xac   : > { %675 = vmatpush1.bf16.msra.mxu1 %v1047_v49 }
 0x15e   : > { %v425_v57 = vpop.f32.mrb[0].mxu0 }
 0x15f   : > { %v426_v58 = vadd.f32 %v425_v57, %v298_v55  ;;  %v427_v59 = vpop.f32.mrb[1].mxu0 }
 0x160   : > { %v428_v60 = vadd.f32 %v427_v59, %v302_v56  ;;  %v429_v61 = vpop.f32.mrb[2].mxu0 }
 0x161   : > { %v430_v62 = vadd.f32 %v429_v61, %v298_v55  ;;  %v431_v63 = vpop.f32.mrb[3].mxu0  ;;  %v434_v1 = vmax.f32 %v426_v58, 0.0 }
 0x162   : > { %v432_v0 = vadd.f32 %v431_v63, %v302_v56  ;;  %v435_v3 = vmax.f32 %v428_v60, 0.0 }
 0x163   : > { %v436_v2 = vmax.f32 %v430_v62, 0.0 }
 0x164   : > { %v437_v4 = vmax.f32 %v432_v0, 0.0 }
 0x165   : > { %v438_v5 = vpack.c.bf16 %v436_v2, %v434_v1 }
 0x166   : > { %v439_v6 = vpack.c.bf16 %v437_v4, %v435_v3 }
 0x168   : > { %676 = vmatprep.mubr.bf16.mxu1 %v439_v6 }
 0x169   : > { %677 = vmatmul.mubr.bf16.vlgmr.msra.gmra.mrb[0].mxu1 %v438_v5 }
 0x23c   : > { %v678_v10 = vpop.f32.mrb[0].mxu1 }
 0x23d   : > { %v679_v11 = vadd.f32 %v678_v10, %v477_v8  ;;  %v680_v12 = vpop.f32.mrb[1].mxu1 }
 0x23e   : > { %v681_v13 = vadd.f32 %v680_v12, %v481_v9  ;;  %v682_v14 = vpop.f32.mrb[2].mxu1 }
 0x23f   : > { %v683_v15 = vadd.f32 %v682_v14, %v477_v8  ;;  %v684_v16 = vpop.f32.mrb[3].mxu1  ;;  %v687_v17 = vmul.f32 %v679_v11, %v679_v11 }
 0x240   : > { %v685_v18 = vadd.f32 %v684_v16, %v481_v9  ;;  %v688_v19 = vmul.f32 %v681_v13, %v681_v13 }
 0x241   : > { %v689_v20 = vmul.f32 %v683_v15, %v683_v15 }
 0x242   : > { %v690_v21 = vmul.f32 %v685_v18, %v685_v18  ;;  %v691_v22 = vadd.f32 %v688_v19, %v687_v17 }
 0x244   : > { %692 = vadd.xlane.f32.xlu0 %v691_v22  ;;  %v694_v23 = vadd.f32 %v690_v21, %v689_v20 }
 0x248   : > { %695 = vadd.xlane.f32.xlu0 %v694_v23 }
 0x2d1   : > { %v693_v24 = vpop.xlane.xlu0 %692 }
 0x2d2   : > { %1048 = vrsqrt.f32 %v693_v24  ;;  %vm699_vm0 = vcmp.eq.f32.partialorder %v693_v24, inf  ;;  %v702_v28 = vand.u32 2147483648, %v693_v24  ;;  %vm701_vm1 = vcmp.eq.f32.partialorder %v693_v24, 0.0 }
 0x2d5   : > { %v696_v25 = vpop.xlane.xlu0 %695 }
 0x2d6   : > { %1050 = vrsqrt.f32 %v696_v25  ;;  %vm706_vm2 = vcmp.eq.f32.partialorder %v696_v25, inf  ;;  %v709_v34 = vand.u32 2147483648, %v696_v25  ;;  %vm708_vm3 = vcmp.eq.f32.partialorder %v696_v25, 0.0 }
 0x2dc   : > { %v1049_v26 = vpop.eup %1048 }
 0x2dd   : > { %v698_v27 = vmul.f32 %v1049_v26, %v693_v24 }
 0x2df   : > { %v700_v29 = vsel %vm699_vm0, %v693_v24, %v698_v27 }
 0x2e0   : > { %v1051_v30 = vpop.eup %1050  ;;  %v703_v31 = vsel %vm701_vm1, %v702_v28, %v700_v29 }
 0x2e1   : > { %v711_v32 = vadd.f32 1e-07, %v703_v31  ;;  %v705_v33 = vmul.f32 %v1051_v30, %v696_v25 }
 0x2e3   : > { %1052 = vrcp.f32 %v711_v32  ;;  %v707_v35 = vsel %vm706_vm2, %v696_v25, %v705_v33 }
 0x2e4   : > { %v710_v36 = vsel %vm708_vm3, %v709_v34, %v707_v35 }
 0x2e5   : > { %v712_v37 = vadd.f32 1e-07, %v710_v36 }
 0x2e7   : > { %1054 = vrcp.f32 %v712_v37 }
 0x2ed   : > { %v1053_v38 = vpop.eup %1052 }
 0x2ee   : > { %v715_v39 = vmul.f32 %v1053_v38, %v679_v11  ;;  %v716_v40 = vmul.f32 %v1053_v38, %v681_v13 }
 0x2f0   : > { %719 = vst [vmem:[%s271_s30] sm:$0xff] %v715_v39  ;;  %720 = vst [vmem:[%s271_s30 + $0x8] sm:$0xff] %v716_v40 }
 0x2f1   : > { %v1055_v41 = vpop.eup %1054 }
 0x2f2   : > { %v717_v42 = vmul.f32 %v1055_v41, %v683_v15  ;;  %v718_v43 = vmul.f32 %v1055_v41, %v685_v18 }
 0x2f4   : > { %721 = vst [vmem:[%s271_s30 + $0x10] sm:$0xff] %v717_v42  ;;  %722 = vst [vmem:[%s271_s30 + $0x18] sm:$0xff] %v718_v43 }
 0x2f5   : > { %1155 = shalt.err (!%p1152_p2)
}
 0x2f6   : > { %s1156_s24 = scalar_lea.hbm %s1453_s12, 512  ;;  %s1160_s10 = scalar_lea.hbm %s1504_s5, 1024 }
 0x2f7   : > { %p1157_p13 = scmp.ne.s32.totalorder %s1453_s12, %s1156_s24  ;;  %p1161_p4 = scmp.lt.u32.totalorder %s1453_s12, %s1504_s5 }
 0x2f8   : > { %p1162_p5 = scmp.lt.u32.totalorder %s1160_s10, %s1156_s24  ;;  %p1164_p11 = scmp.lt.u32.totalorder %s1156_s24, %s1453_s12 }
 0x2f9   : > { %p1158_p6 = pnand %p1157_p13, %p1518_p0 }
 0x2fa   : > { %p1163_p8 = por %p1162_p5, %p1161_p4 }
 0x2fb   : > { %p1159_p10 = pneg %p1158_p6 }
 0x2fc   : > { %p1165_p1 = por %p1164_p11, %p1163_p8 }
 0x2fe   : > { %p1166_p3 = pnand %p1165_p1, %p1159_p10 }
 0x300   : > { %1169 = shalt.err (!%p1166_p3)
}
 0x301   : > { %s1223_s30 = smov 256   ;;  %s1224_s16 = smov 16  }
 0x302   : > { %911 = dma.vmem_to_hbm [thread:$0]  (%p1518_p0), %s1455_s15, 512, %s1453_s12, %s724_s22, %s1223_s30, %s1223_s30, %s1224_s16  }
 0x303 PF: > { %s753_s9 = sand.u32 1, %s1200_s18   ;;  %p1519_p7 = scmp.ne.s32.totalorder %s1509_s25, 0 }
 0x304   : > { %p1520_p9 = scmp.ge.s32.totalorder %s1212_s21, 2  ;;  %s754_s13 = scalar_lea.sflag [#allocation4], %s753_s9 }
 0x306   : > { %p925_p12 = pnand %p1520_p9, %p1519_p7 }
 0x308   : > { %1195 = dma.done.wait (!%p925_p12), %s754_s13, 512  }
 0x309   : > { %1197 = vsyncadd (!%p925_p12), %s754_s13, 4294966784  ;;  %p19_p2 = scmp.ge.s32.totalorder %s1365_s14, 4   ;;  %s1521_s18 = smov %s1204_s19 }
 0x30a   : > { %s1522_s19 = smov %s1208_s20  ;;  %s1523_s20 = smov %s1381_s27 }
 0x30b   : > { %s1524_s21 = smov %s1365_s14  ;;  %21 = sbr.rel (!%p19_p2) target bundleno = 6 (0x6), region = 93 }
 0x312   :  { %759 = vsyncpa [#allocation3], 1 }
 0x313   :  { %761 = vsyncpa [#allocation3 + $0x1], 1 }
 0x314   :  { %762 = vsyncpa [#allocation6], 1 }
 0x315   :  { %763 = vsyncpa [#allocation4], 1 }
 0x316   :  { %765 = vsyncpa [#allocation4 + $0x1], 1 }

</bundles_post_ra>
